<compile_context>
chip_gen: v7x
topology: tpu7x:2x2x1
jax: 0.10.0
libtpu: 0.0.40
codegen_flags: <defaults>
</compile_context>

<pallas_src>
import functools
import math

import jax
import jax.numpy as jnp
from jax.experimental import pallas as pl
from jax.experimental.pallas import tpu as pltpu


def _iabn1d_kernel(x_ref, p_ref, o_ref, *, k, eps, inv_l, l_len,
                   use_adjust, use_affine):
    # x_ref : (TC, L)  one batch element's channel tile (batch dim squeezed)
    # p_ref : (TC, 4)  packed f32 params [running_mean, running_var, weight, bias]
    mu_b = p_ref[:, 0:1]          # (TC, 1)
    sigma2_b = p_ref[:, 1:2]      # (TC, 1)

    x = x_ref[...]                # (TC, L), input dtype

    if use_adjust:  # static: L > threshold
        # One-pass per-instance stats over L, accumulated in f32.
        xf = x.astype(jnp.float32)
        s1 = jnp.sum(xf, axis=-1, keepdims=True)          # (TC, 1)
        s2 = jnp.sum(xf * xf, axis=-1, keepdims=True)     # (TC, 1)
        mu = s1 * inv_l
        # unbiased variance: (s2 - L*mu^2)/(L-1); clamp tiny negatives from cancellation
        sigma2 = jnp.maximum((s2 - mu * s1) / (l_len - 1), 0.0)

        s_mu = jnp.sqrt((sigma2_b + eps) * inv_l)
        s_sigma2 = (sigma2_b + eps) * math.sqrt(2.0 / (l_len - 1))

        def softshrink(v, lbd):
            return jnp.maximum(v - lbd, 0.0) - jnp.maximum(-(v + lbd), 0.0)

        mu_adj = mu_b + softshrink(mu - mu_b, k * s_mu)
        sigma2_adj = sigma2_b + softshrink(sigma2 - sigma2_b, k * s_sigma2)
        sigma2_adj = jnp.maximum(sigma2_adj, 0.0)          # F.relu
    else:
        mu_adj = mu_b
        sigma2_adj = sigma2_b

    inv_std = jax.lax.rsqrt(sigma2_adj + eps)              # (TC, 1) f32
    if use_affine:
        scale = p_ref[:, 2:3] * inv_std
        shift = p_ref[:, 3:4] - mu_adj * scale
    else:
        scale = inv_std
        shift = -mu_adj * scale

    # Keep the full-tile elementwise pass in bf16 when the input is bf16
    # (v6e/v7x bf16 VALU); f32 otherwise (v5e has no bf16 VALU).
    cdt = jnp.bfloat16 if x.dtype == jnp.bfloat16 else jnp.float32
    y = x.astype(cdt) * scale.astype(cdt) + shift.astype(cdt)
    o_ref[...] = y.astype(o_ref.dtype)


def _choose_channel_tile(C, L, itemsize, target_bytes=2 << 20):
    """Largest channel tile that is a multiple of 8, divides C, and keeps a
    single (TC, L) block <= target_bytes (~2 MiB is enough for HBM roofline)."""
    if C % 8 != 0:
        return C  # block dim equal to the full array dim is always legal
    max_tc = max(8, ((target_bytes // max(1, L * itemsize)) // 8) * 8)
    tc = min(C, max_tc)
    while tc > 8 and C % tc != 0:
        tc -= 8
    return tc


def instance_aware_batchnorm1d(x, running_mean, running_var, weight=None,
                               bias=None, *, k=3.0, eps=1e-5, threshold=1,
                               affine=True):
    B, C, L = x.shape
    use_affine = bool(affine) and (weight is not None) and (bias is not None)

    rm = running_mean.reshape(C).astype(jnp.float32)
    rv = running_var.reshape(C).astype(jnp.float32)
    w = (weight.reshape(C).astype(jnp.float32) if use_affine
         else jnp.ones((C,), jnp.float32))
    b = (bias.reshape(C).astype(jnp.float32) if use_affine
         else jnp.zeros((C,), jnp.float32))
    params = jnp.stack([rm, rv, w, b], axis=-1)            # (C, 4): one DMA

    itemsize = jnp.dtype(x.dtype).itemsize
    TC = _choose_channel_tile(C, L, itemsize)
    grid = (B, C // TC)

    kernel = functools.partial(
        _iabn1d_kernel,
        k=float(k), eps=float(eps), inv_l=1.0 / L, l_len=L,
        use_adjust=(L > threshold), use_affine=use_affine,
    )

    # Batch dim squeezed (None) -> kernel sees (TC, L); L on the lane axis.
    x_spec = pl.BlockSpec((None, TC, L), lambda bi, ci: (bi, ci, 0))
    p_spec = pl.BlockSpec((TC, 4), lambda bi, ci: (ci, 0))

    cost = pl.CostEstimate(
        flops=8 * B * C * L,
        transcendentals=B * C,
        bytes_accessed=2 * B * C * L * itemsize + params.size * 4,
    )

    return pl.pallas_call(
        kernel,
        out_shape=jax.ShapeDtypeStruct((B, C, L), x.dtype),
        grid=grid,
        in_specs=[x_spec, p_spec],
        out_specs=x_spec,
        compiler_params=pltpu.CompilerParams(
            dimension_semantics=("parallel", "parallel"),
            vmem_limit_bytes=32 * 1024 * 1024,
        ),
        cost_estimate=cost,
    )(x, params)


def _reference(x, rm, rv, w, b, *, k=3.0, eps=1e-5, threshold=1):
    # Pure-JAX reference mirroring the PyTorch eval-mode forward.
    B, C, L = x.shape
    mu = jnp.mean(x, axis=2, keepdims=True)
    sigma2 = jnp.var(x, axis=2, keepdims=True, ddof=1)
    mu_b = rm.reshape(1, C, 1)
    sigma2_b = rv.reshape(1, C, 1)
    if L <= threshold:
        mu_adj, sigma2_adj = mu_b, sigma2_b
    else:
        s_mu = jnp.sqrt((sigma2_b + eps) / L)
        s_sigma2 = (sigma2_b + eps) * math.sqrt(2.0 / (L - 1))
        ss = lambda v, lbd: jnp.maximum(v - lbd, 0.0) - jnp.maximum(-(v + lbd), 0.0)
        mu_adj = mu_b + ss(mu - mu_b, k * s_mu)
        sigma2_adj = jnp.maximum(sigma2_b + ss(sigma2 - sigma2_b, k * s_sigma2), 0.0)
    x_n = (x - mu_adj) * jax.lax.rsqrt(sigma2_adj + eps)
    return x_n * w.reshape(1, C, 1) + b.reshape(1, C, 1)


if __name__ == "__main__":
    # Small but TPU-friendly demo shape: C multiple of 8 (sublane), L multiple
    # of 128 (lane-dense stores).
    B, C, L = 2, 8, 128

    key = jax.random.PRNGKey(0)
    kx, km, kv, kw, kb = jax.random.split(key, 5)

    x = jax.random.normal(kx, (B, C, L), dtype=jnp.float32)
    running_mean = 0.1 * jax.random.normal(km, (C,), dtype=jnp.float32)
    running_var = jax.random.uniform(kv, (C,), dtype=jnp.float32,
                                     minval=0.5, maxval=1.5)
    weight = jax.random.uniform(kw, (C,), dtype=jnp.float32,
                                minval=0.8, maxval=1.2)
    bias = 0.05 * jax.random.normal(kb, (C,), dtype=jnp.float32)

    out = instance_aware_batchnorm1d(
        x, running_mean, running_var, weight, bias,
        k=3.0, eps=1e-5, threshold=1, affine=True)
    out = jax.block_until_ready(out)

    ref = _reference(x, running_mean, running_var, weight, bias,
                     k=3.0, eps=1e-5, threshold=1)

    assert out.shape == (B, C, L) and out.dtype == x.dtype
    assert jnp.allclose(out, ref, atol=2e-5, rtol=2e-5), "mismatch vs reference"
    print("KERNEL_OK")
</pallas_src>

<mosaic_0001>
module attributes {stable_mosaic.version = 11 : i64} {
  func.func @_iabn1d_kernel(%arg0: i32, %arg1: i32, %arg2: memref<1x8x128xf32, #tpu.memory_space<vmem>>, %arg3: memref<8x4xf32, #tpu.memory_space<vmem>>, %arg4: memref<1x8x128xf32, #tpu.memory_space<vmem>>) attributes {dimension_semantics = [#tpu.dimension_semantics<parallel>, #tpu.dimension_semantics<parallel>], iteration_bounds = array<i64: 2, 1>, scalar_prefetch = 0 : i64, scratch_operands = 0 : i64, tpu.core_type = #tpu.core_type<tc>, window_params = [{transform_indices = @transform_0, window_bounds = array<i64: 1, 8, 128>}, {transform_indices = @transform_1, window_bounds = array<i64: 8, 4>}, {transform_indices = @transform_2, window_bounds = array<i64: 1, 8, 128>}]} {
    %c0 = arith.constant 0 : index
    %c0_0 = arith.constant 0 : index
    %0 = vector.load %arg3[%c0, %c0_0] : memref<8x4xf32, #tpu.memory_space<vmem>>, vector<8x1xf32>
    %c0_1 = arith.constant 0 : index
    %c1 = arith.constant 1 : index
    %1 = vector.load %arg3[%c0_1, %c1] : memref<8x4xf32, #tpu.memory_space<vmem>>, vector<8x1xf32>
    %c0_2 = arith.constant 0 : index
    %c0_3 = arith.constant 0 : index
    %c0_4 = arith.constant 0 : index
    %2 = vector.load %arg2[%c0_2, %c0_3, %c0_4] : memref<1x8x128xf32, #tpu.memory_space<vmem>>, vector<1x8x128xf32>
    %3 = vector.shape_cast %2 : vector<1x8x128xf32> to vector<8x128xf32>
    %cst = arith.constant dense<0.000000e+00> : vector<8xf32>
    %4 = vector.multi_reduction <add>, %3, %cst [1] : vector<8x128xf32> to vector<8xf32>
    %5 = vector.shape_cast %4 : vector<8xf32> to vector<8x1xf32>
    %6 = arith.mulf %3, %3 : vector<8x128xf32>
    %cst_5 = arith.constant dense<0.000000e+00> : vector<8xf32>
    %7 = vector.multi_reduction <add>, %6, %cst_5 [1] : vector<8x128xf32> to vector<8xf32>
    %8 = vector.shape_cast %7 : vector<8xf32> to vector<8x1xf32>
    %cst_6 = arith.constant 7.812500e-03 : f32
    %9 = vector.broadcast %cst_6 : f32 to vector<8x1xf32>
    %10 = arith.mulf %5, %9 : vector<8x1xf32>
    %11 = arith.mulf %10, %5 : vector<8x1xf32>
    %12 = arith.subf %8, %11 : vector<8x1xf32>
    %cst_7 = arith.constant 1.270000e+02 : f32
    %13 = vector.broadcast %cst_7 : f32 to vector<8x1xf32>
    %14 = arith.divf %12, %13 : vector<8x1xf32>
    %cst_8 = arith.constant 0.000000e+00 : f32
    %15 = vector.broadcast %cst_8 : f32 to vector<8x1xf32>
    %16 = arith.maximumf %14, %15 : vector<8x1xf32>
    %cst_9 = arith.constant 9.99999974E-6 : f32
    %17 = vector.broadcast %cst_9 : f32 to vector<8x1xf32>
    %18 = arith.addf %1, %17 : vector<8x1xf32>
    %cst_10 = arith.constant 7.812500e-03 : f32
    %19 = vector.broadcast %cst_10 : f32 to vector<8x1xf32>
    %20 = arith.mulf %18, %19 : vector<8x1xf32>
    %21 = math.sqrt %20 : vector<8x1xf32>
    %cst_11 = arith.constant 9.99999974E-6 : f32
    %22 = vector.broadcast %cst_11 : f32 to vector<8x1xf32>
    %23 = arith.addf %1, %22 : vector<8x1xf32>
    %cst_12 = arith.constant 0.125491157 : f32
    %24 = vector.broadcast %cst_12 : f32 to vector<8x1xf32>
    %25 = arith.mulf %23, %24 : vector<8x1xf32>
    %26 = arith.subf %10, %0 : vector<8x1xf32>
    %cst_13 = arith.constant 3.000000e+00 : f32
    %27 = vector.broadcast %cst_13 : f32 to vector<8x1xf32>
    %28 = arith.mulf %27, %21 : vector<8x1xf32>
    %29 = arith.subf %26, %28 : vector<8x1xf32>
    %cst_14 = arith.constant 0.000000e+00 : f32
    %30 = vector.broadcast %cst_14 : f32 to vector<8x1xf32>
    %31 = arith.maximumf %29, %30 : vector<8x1xf32>
    %32 = arith.addf %26, %28 : vector<8x1xf32>
    %cst_15 = arith.constant 0.000000e+00 : f32
    %33 = vector.broadcast %cst_15 : f32 to vector<8x1xf32>
    %34 = arith.subf %33, %32 : vector<8x1xf32>
    %cst_16 = arith.constant 0.000000e+00 : f32
    %35 = vector.broadcast %cst_16 : f32 to vector<8x1xf32>
    %36 = arith.maximumf %34, %35 : vector<8x1xf32>
    %37 = arith.subf %31, %36 : vector<8x1xf32>
    %38 = arith.addf %0, %37 : vector<8x1xf32>
    %39 = arith.subf %16, %1 : vector<8x1xf32>
    %cst_17 = arith.constant 3.000000e+00 : f32
    %40 = vector.broadcast %cst_17 : f32 to vector<8x1xf32>
    %41 = arith.mulf %40, %25 : vector<8x1xf32>
    %42 = arith.subf %39, %41 : vector<8x1xf32>
    %cst_18 = arith.constant 0.000000e+00 : f32
    %43 = vector.broadcast %cst_18 : f32 to vector<8x1xf32>
    %44 = arith.maximumf %42, %43 : vector<8x1xf32>
    %45 = arith.addf %39, %41 : vector<8x1xf32>
    %cst_19 = arith.constant 0.000000e+00 : f32
    %46 = vector.broadcast %cst_19 : f32 to vector<8x1xf32>
    %47 = arith.subf %46, %45 : vector<8x1xf32>
    %cst_20 = arith.constant 0.000000e+00 : f32
    %48 = vector.broadcast %cst_20 : f32 to vector<8x1xf32>
    %49 = arith.maximumf %47, %48 : vector<8x1xf32>
    %50 = arith.subf %44, %49 : vector<8x1xf32>
    %51 = arith.addf %1, %50 : vector<8x1xf32>
    %cst_21 = arith.constant 0.000000e+00 : f32
    %52 = vector.broadcast %cst_21 : f32 to vector<8x1xf32>
    %53 = arith.maximumf %51, %52 : vector<8x1xf32>
    %cst_22 = arith.constant 9.99999974E-6 : f32
    %54 = vector.broadcast %cst_22 : f32 to vector<8x1xf32>
    %55 = arith.addf %53, %54 : vector<8x1xf32>
    %56 = math.rsqrt %55 : vector<8x1xf32>
    %c0_23 = arith.constant 0 : index
    %c2 = arith.constant 2 : index
    %57 = vector.load %arg3[%c0_23, %c2] : memref<8x4xf32, #tpu.memory_space<vmem>>, vector<8x1xf32>
    %58 = arith.mulf %57, %56 : vector<8x1xf32>
    %c0_24 = arith.constant 0 : index
    %c3 = arith.constant 3 : index
    %59 = vector.load %arg3[%c0_24, %c3] : memref<8x4xf32, #tpu.memory_space<vmem>>, vector<8x1xf32>
    %60 = arith.mulf %38, %58 : vector<8x1xf32>
    %61 = arith.subf %59, %60 : vector<8x1xf32>
    %62 = vector.broadcast %58 : vector<8x1xf32> to vector<8x128xf32>
    %63 = arith.mulf %3, %62 : vector<8x128xf32>
    %64 = vector.broadcast %61 : vector<8x1xf32> to vector<8x128xf32>
    %65 = arith.addf %63, %64 : vector<8x128xf32>
    %c0_25 = arith.constant 0 : index
    %c0_26 = arith.constant 0 : index
    %c0_27 = arith.constant 0 : index
    %66 = vector.load %arg4[%c0_25, %c0_26, %c0_27] : memref<1x8x128xf32, #tpu.memory_space<vmem>>, vector<1x8x128xf32>
    %67 = vector.shape_cast %66 : vector<1x8x128xf32> to vector<8x128xf32>
    %68 = vector.shape_cast %65 : vector<8x128xf32> to vector<1x8x128xf32>
    tpu.vector_store %arg4[%c0_25, %c0_26, %c0_27], %68 {strides = array<i32>} : memref<1x8x128xf32, #tpu.memory_space<vmem>>, vector<1x8x128xf32>,
    return
  }
  func.func @transform_0(%arg0: i32, %arg1: i32) -> (i32, i32, i32) {
    %c0_i32 = arith.constant 0 : i32
    %c0_i32_0 = arith.constant 0 : i32
    return %arg0, %arg1, %c0_i32 : i32, i32, i32
  }
  func.func @transform_1(%arg0: i32, %arg1: i32) -> (i32, i32) {
    %c0_i32 = arith.constant 0 : i32
    %c0_i32_0 = arith.constant 0 : i32
    return %arg1, %c0_i32 : i32, i32
  }
  func.func @transform_2(%arg0: i32, %arg1: i32) -> (i32, i32, i32) {
    %c0_i32 = arith.constant 0 : i32
    %c0_i32_0 = arith.constant 0 : i32
    return %arg0, %arg1, %c0_i32 : i32, i32, i32
  }
}

</mosaic_0001>

<bundles_post_ra>
// kernel: tpu_custom_call.1
= control target key start
LH: loop header
LB: loop body
LE: loop exit
PB: predicated region body
PF: predicated region fallthrough
CT: control target
= control target key end

     0   :  { %7 = vsyncpa [#allocation3], 0  ;;  %s789_s0 = inlined_call_operand.hbm [shape: f32[2,8,128], index: 0, kind: input, shape index: {}]   ;;  %s790_s1 = inlined_call_operand.vmem [shape: f32[8,4], index: 1, kind: input, shape index: {}]   ;;  %s791_s2 = inlined_call_operand.hbm [shape: f32[2,8,128], index: 2, kind: output, shape index: {}]  }
   0x1   :  { %9 = vsyncpa [#allocation3 + $0x1], 0 }
   0x2   :  { %10 = vsyncpa [#allocation4], 0 }
   0x3   :  { %12 = vsyncpa [#allocation4 + $0x1], 0  ;;  %s604_s9 = smov 0   ;;  %s606_s10 = smov 0  }
   0x4   :  { %s608_s11 = smov 0   ;;  %s610_s12 = smov 0  }
   0x5   :  { %s612_s13 = smov 0   ;;  %s614_s14 = smov 0  }
   0x6 LB: > { %s378_s15 = sadd.s32 4294967295, %s579_s14   ;;  %s379_s16 = sadd.s32 4294967294, %s579_s14   ;;  %s579_s14 = sphi %s614_s14, %s18_s14   ;;  %s575_s13 = sphi %s612_s13, %s807_s13   ;;  %s571_s12 = sphi %s610_s12, %s806_s12   ;;  %s567_s11 = sphi %s608_s11, %s805_s11   ;;  %s563_s10 = sphi %s606_s10, %s804_s10   ;;  %s559_s9 = sphi %s604_s9, %s803_s9  }
   0x7   : > { %s30_s17 = sadd.s32 1, %s575_s13  ;;  %s39_s18 = sadd.s32 1, %s567_s11 }
   0x8   : > { %p32_p0 = scmp.ge.s32.totalorder %s30_s17, 2  ;;  %p46_p1 = scmp.ne.s32.totalorder %s567_s11, %s563_s10 }
   0x9   : > { %p47_p2 = scmp.eq.s32.totalorder %s579_s14, 0  ;;  %p52_p3 = scmp.ne.s32.totalorder %s563_s10, %s559_s9 }
   0xa   : > { %s809_s17 = smov (%p32_p0, %s30_s17), 0  ;;  %p53_p5 = scmp.eq.s32.totalorder %s378_s15, 0 }
   0xb   : > { %p645_p4 = por %p47_p2, %p46_p1  ;;  %s34_s20 = ssub.s32 %s575_s13, %s809_s17 }
   0xc   : > { %p104_p6 = scmp.eq.s32.totalorder %s378_s15, 1  ;;  %p37_p7 = scmp.eq.s32.totalorder %s34_s20, 0 }
   0xd   : > { %p651_p8 = por %p53_p5, %p52_p3  ;;  %p110_p10 = scmp.eq.s32.totalorder %s379_s16, 1 }
   0xe   : > { %p655_p9 = por %p104_p6, %p46_p1  ;;  %p404_p13 = scmp.lt.s32.totalorder %s579_s14, 2 }
   0xf   : > { %s660_s23 = scalar_select %p37_p7, %s567_s11, %s39_s18  }
  0x10   : > { %s795_s22 = scalar_select %p655_p9, 1, 0 }
  0x11   : > { %p662_p11 = por %p110_p10, %p52_p3  ;;  %s137_s25 = sand.u32 1, %s567_s11  }
  0x12   : > { %s383_s26 = sshll.u32 %s137_s25, 3  ;;  %s384_s27 = sshll.u32 %s575_s13, 7 }
  0x13   : > { %s796_s24 = scalar_select %p662_p11, 1, 0 }
  0x14   : > { %s673_s30 = scalar_lea.hbm %s789_s0, %s384_s27  ;;  %s141_s3 = scalar_lea.vmem [#allocation2], %s383_s26 }
  0x15   : > { %s149_s4 = sshll.u32 %s141_s3, 4  ;;  %p679_p0 = pnand %p404_p13, %p645_p4  ;;  %s675_s4 = int_to_ptr.vmem [resolvable:$true] %s149_s4 }
  0x16   : > { %s138_s6 = scalar_lea.sflag [#allocation3], %s137_s25  ;;  %s467_s7 = scalar_lea.hbm %s673_s30, 128 }
  0x17   : > { %p468_p3 = scmp.ne.s32.totalorder %s673_s30, %s467_s7  ;;  %p469_p5 = pneg %p679_p0 }
  0x18   : > { %s472_s16 = scalar_lea.hbm %s789_s0, 256  ;;  %p473_p4 = scmp.lt.u32.totalorder %s673_s30, %s789_s0 }
  0x19   : > { %p470_p6 = pnand %p469_p5, %p468_p3  ;;  %p474_p10 = scmp.lt.u32.totalorder %s472_s16, %s467_s7 }
  0x1a   : > { %p476_p12 = scmp.lt.u32.totalorder %s467_s7, %s673_s30 }
  0x1b   : > { %p471_p7 = pneg %p470_p6  ;;  %p475_p13 = por %p474_p10, %p473_p4 }
  0x1d   : > { %p477_p1 = por %p476_p12, %p475_p13 }
  0x1f   : > { %p478_p2 = pnand %p477_p1, %p471_p7 }
  0x21   : > { %481 = shalt.err (!%p478_p2)
}
  0x22   : > { %s482_s20 = scalar_lea.vmem %s675_s4, 128  ;;  %s581_s25 = smov [#allocation2]  }
  0x23   : > { %p483_p3 = scmp.ne.s32.totalorder %s675_s4, %s482_s20  ;;  %s487_s26 = sshll.u32 %s581_s25, 4  ;;  %s488_s26 = int_to_ptr.vmem [resolvable:$false] %s487_s26 }
  0x24   : > { %s489_s27 = scalar_lea.vmem %s488_s26, 256  ;;  %p490_p9 = scmp.lt.s32.totalorder %s675_s4, %s488_s26 }
  0x25   : > { %p485_p6 = pnand %p483_p3, %p469_p5  ;;  %p491_p4 = scmp.lt.s32.totalorder %s489_s27, %s482_s20 }
  0x27   : > { %p486_p11 = pneg %p485_p6  ;;  %p492_p10 = por %p491_p4, %p490_p9 }
  0x29   : > { %p493_p12 = pnand %p492_p10, %p486_p11 }
  0x2b   : > { %496 = shalt.err (!%p493_p12)
}
  0x2c   : > { %399 = dma.hbm_to_vmem [thread:$0]  (!%p679_p0), %s673_s30, 128, %s675_s4, %s138_s6  }
  0x2d   : > { %p798_p1 = scmp.lt.s32.totalorder %s579_s14, 3  ;;  %p799_p2 = scmp.ge.s32.totalorder %s579_s14, 1 }
  0x2f   : > { %p155_p5 = pnand %p799_p2, %p798_p1 }
  0x30   : > { %s715_s28 = sand.u32 (!%p155_p5), 1, %s563_s10  }
  0x31   : > { %158 = sbr.rel (%p155_p5) target bundleno = 732 (0x2dc), region = 28  ;;  %s386_s29 = sshll.u32 (!%p155_p5), %s715_s28, 3 }
  0x32   : > { %s161_s3 = scalar_lea.sflag (!%p155_p5), [#allocation3], %s715_s28  ;;  %s164_s5 = scalar_lea.vmem (!%p155_p5), [#allocation2], %s386_s29 }
  0x38   : > { %550 = dma.done.wait (%p651_p8), %s161_s3, 128  }
  0x39   : > { %552 = vsyncadd (%p651_p8), %s161_s3, 4294967168  ;;  %v725_v0 = vld [vmem:[%s164_s5] sm:$0xff]  ;;  %s582_s21 = smov 1   ;;  %s583_s6 = smov 127   ;;  %v584_v31 = vmov 2   ;;  %v586_v40 = vmov 3  }
  0x3a   : > { %195 = vadd.xlane.f32.xlu0 %v725_v0  ;;  %v197_v1 = vmul.f32 %v725_v0, %v725_v0  ;;  %v193_v3 = vld [vmem:[%s790_s1] sm:$0xff]  ;;  %460 = vset.pattern.permute.xlu1 %v584_v31  ;;  %s585_s7 = smov 126   ;;  %s587_s8 = smov 3  }
  0x3b   : > { %v206_v5 = vadd.f32 1e-05, %v193_v3  ;;  %462 = vset.pattern.permute.xlu0 %v586_v40  ;;  %s389_s15 = sshll.u32 %s571_s12, 7  ;;  %s188_s16 = scalar_lea.vmem [#allocation5], %s386_s29 }
  0x3c   : > { %s283_s18 = sshll.u32 %s188_s16, 4  ;;  %s740_s25 = scalar_lea.hbm %s791_s2, %s389_s15  ;;  %s742_s18 = int_to_ptr.vmem [resolvable:$true] %s283_s18 }
  0x3d   : > { %v215_v9 = vmul.f32 0.12549116, %v206_v5  ;;  %v207_v13 = vmul.f32 0.0078125, %v206_v5  ;;  %s269_s26 = scalar_lea.sflag [#allocation4], %s715_s28  ;;  %s497_s12 = scalar_lea.vmem %s742_s18, 128 }
  0x3e   : > { %198 = vadd.xlane.f32.xlu0 %v197_v1  ;;  %p498_p8 = scmp.ne.s32.totalorder %s742_s18, %s497_s12  ;;  %p800_p9 = scmp.ne.s32.totalorder %s795_s22, 0 }
  0x3f   : > { %v230_v12 = vmul.f32 3.0, %v215_v9  ;;  %463 = vrsqrt.f32 %v207_v13  ;;  %vm210_vm0 = vcmp.eq.f32.partialorder %v207_v13, inf  ;;  %v213_v26 = vand.u32 2147483648, %v207_v13  ;;  %s588_s27 = smov [#allocation5]  }
  0x40   : > { %vm212_vm1 = vcmp.eq.f32.partialorder %v207_v13, 0.0  ;;  %p499_p11 = pnand %p498_p8, %p800_p9  ;;  %s501_s29 = sshll.u32 %s588_s27, 4  ;;  %s502_s29 = int_to_ptr.vmem [resolvable:$false] %s501_s29 }
  0x41   : > { %s503_s3 = scalar_lea.vmem %s502_s29, 256  ;;  %p504_p7 = scmp.lt.s32.totalorder %s742_s18, %s502_s29 }
  0x42   : > { %p500_p0 = pneg %p499_p11  ;;  %p505_p13 = scmp.lt.s32.totalorder %s503_s3, %s497_s12 }
  0x44   : > { %p506_p3 = por %p505_p13, %p504_p7 }
  0x46   : > { %p507_p6 = pnand %p506_p3, %p500_p0 }
  0x49   : > { %v464_v23 = vpop.eup %463 }
  0x4a   : > { %v209_v25 = vmul.f32 %v464_v23, %v207_v13 }
  0x4c   : > { %v211_v27 = vsel %vm210_vm0, %v207_v13, %v209_v25 }
  0x4d   : > { %v214_v28 = vsel %vm212_vm1, %v213_v26, %v211_v27 }
  0x4e   : > { %v217_v30 = vmul.f32 3.0, %v214_v28 }
  0xc7   : > { %v196_v2 = vpop.xlane.xlu0 %195 }
  0xc8   : > { %v200_v4 = vmul.f32 0.0078125, %v196_v2 }
  0xca   : > { %v201_v6 = vmul.f32 %v200_v4, %v196_v2  ;;  %v216_v35 = vsub.f32 %v200_v4, %v193_v3 }
  0xcb   : > { %v199_v7 = vpop.xlane.xlu0 %198 }
  0xcc   : > { %v202_v8 = vsub.f32 %v199_v7, %v201_v6 }
  0xce   : > { %v204_v10 = vmul.f32 0.007874016, %v202_v8 }
  0xd0   : > { %v205_v11 = vmax.f32 %v204_v10, 0.0 }
  0xd2   : > { %v229_v14 = vsub.f32 %v205_v11, %v193_v3 }
  0xd4   : > { %v231_v15 = vsub.f32 %v229_v14, %v230_v12  ;;  %v233_v16 = vadd.f32 %v230_v12, %v229_v14 }
  0xd6   : > { %v234_v17 = vsub.f32 0.0, %v233_v16  ;;  %v232_v18 = vmax.f32 %v231_v15, 0.0 }
  0xd8   : > { %v235_v19 = vmax.f32 %v234_v17, 0.0 }
  0xda   : > { %v236_v20 = vsub.f32 %v232_v18, %v235_v19 }
  0xdc   : > { %v237_v21 = vadd.f32 %v236_v20, %v193_v3 }
  0xde   : > { %v238_v22 = vmax.f32 %v237_v21, 0.0 }
  0xe0   : > { %v239_v24 = vadd.f32 1e-05, %v238_v22 }
  0xe2   : > { %465 = vrsqrt.f32 %v239_v24 }
  0xec   : > { %v466_v29 = vpop.eup %465 }
  0xed   : > { %242 = vrot.lane.b32.xlu1 %v466_v29, %s582_s21 }
  0xf1   : > { %219 = vrot.lane.b32.xlu1 %v217_v30, %s583_s6 }
 0x15f   : > { %v243_v32 = vpop.permute.xlu1 %242 }
 0x160   : > { %v245_v33 = vmul.f32 %v243_v32, %v193_v3 }
 0x162   : > { %247 = vrot.lane.b32.xlu0 %v245_v33, %s585_s7 }
 0x163   : > { %v220_v34 = vpop.permute.xlu1 %219 }
 0x164   : > { %v224_v36 = vadd.f32 %v220_v34, %v216_v35  ;;  %v222_v38 = vsub.f32 %v216_v35, %v220_v34 }
 0x166   : > { %v225_v37 = vsub.f32 0.0, %v224_v36  ;;  %v223_v41 = vmax.f32 %v222_v38, 0.0 }
 0x168   : > { %v226_v39 = vmax.f32 %v225_v37, 0.0 }
 0x16a   : > { %v227_v42 = vsub.f32 %v223_v41, %v226_v39 }
 0x16c   : > { %v228_v43 = vadd.f32 %v227_v42, %v193_v3 }
 0x1d4   : > { %v248_v44 = vpop.permute.xlu0 %247 }
 0x1d5   : > { %v250_v45 = vmul.f32 %v248_v44, %v228_v43 }
 0x1d7   : > { %252 = vrot.lane.b32.xlu1 %v250_v45, %s587_s8 }
 0x1db   : > { %257 = vperm.xlu1 %460, %v245_v33  }
 0x1df   : > { %461 = vset.pattern.permute.xlu1 %v586_v40 }
 0x249   : > { %v253_v46 = vpop.permute.xlu1 %252 }
 0x24a   : > { %v255_v47 = vsub.f32 %v193_v3, %v253_v46 }
 0x24c   : > { %263 = vperm.xlu1 %461, %v255_v47  }
 0x25a   : > { %v258_v48 = vpop.permute.xlu1 %257 }
 0x25b   : > { %v260_v49 = vmul.f32 %v258_v48, %v725_v0 }
 0x2cb   : > { %v264_v50 = vpop.permute.xlu1 %263 }
 0x2cc   : > { %v266_v51 = vadd.f32 %v264_v50, %v260_v49 }
 0x2ce   : > { %267 = vst [vmem:[%s188_s16] sm:$0xff] %v266_v51 }
 0x2cf   : > { %510 = shalt.err (!%p507_p6)
}
 0x2d0   : > { %s511_s28 = scalar_lea.hbm %s740_s25, 128  ;;  %s515_s4 = scalar_lea.hbm %s791_s2, 256 }
 0x2d1   : > { %p512_p4 = scmp.ne.s32.totalorder %s740_s25, %s511_s28  ;;  %p516_p1 = scmp.lt.u32.totalorder %s740_s25, %s791_s2 }
 0x2d2   : > { %p517_p2 = scmp.lt.u32.totalorder %s515_s4, %s511_s28  ;;  %p519_p8 = scmp.lt.u32.totalorder %s511_s28, %s740_s25 }
 0x2d3   : > { %p513_p10 = pnand %p512_p4, %p800_p9 }
 0x2d4   : > { %p518_p5 = por %p517_p2, %p516_p1 }
 0x2d5   : > { %p514_p12 = pneg %p513_p10 }
 0x2d6   : > { %p520_p11 = por %p519_p8, %p518_p5 }
 0x2d8   : > { %p521_p0 = pnand %p520_p11, %p514_p12 }
 0x2da   : > { %524 = shalt.err (!%p521_p0)
}
 0x2db   : > { %394 = dma.vmem_to_hbm [thread:$0]  (%p800_p9), %s742_s18, 128, %s740_s25, %s269_s26  }
 0x2dc PF: > { %s295_s7 = sand.u32 1, %s559_s9   ;;  %p801_p7 = scmp.ne.s32.totalorder %s796_s24, 0 }
 0x2dd   : > { %p802_p13 = scmp.ge.s32.totalorder %s579_s14, 2  ;;  %s296_s8 = scalar_lea.sflag [#allocation4], %s295_s7 }
 0x2df   : > { %p401_p3 = pnand %p802_p13, %p801_p7 }
 0x2e1   : > { %554 = dma.done.wait (!%p401_p3), %s296_s8, 128  }
 0x2e2   : > { %556 = vsyncadd (!%p401_p3), %s296_s8, 4294967168  ;;  %s18_s14 = sadd.s32 1, %s579_s14   ;;  %s803_s9 = smov %s563_s10 }
 0x2e3   : > { %p15_p6 = scmp.ge.s32.totalorder %s18_s14, 4   ;;  %s804_s10 = smov %s567_s11 }
 0x2e4   : > { %s805_s11 = smov %s660_s23  ;;  %s806_s12 = smov %s575_s13 }
 0x2e5   : > { %s807_s13 = smov %s809_s17  ;;  %17 = sbr.rel (!%p15_p6) target bundleno = 6 (0x6), region = 76 }
 0x2ec   :  { %301 = vsyncpa [#allocation3], 1 }
 0x2ed   :  { %303 = vsyncpa [#allocation3 + $0x1], 1 }
 0x2ee   :  { %304 = vsyncpa [#allocation4], 1 }
 0x2ef   :  { %306 = vsyncpa [#allocation4 + $0x1], 1 }

</bundles_post_ra>
